<compile_context>
chip_gen: v5e
topology: v5e:2x2
jax: 0.10.0
libtpu: 0.0.40
codegen_flags: <defaults>
</compile_context>

<pallas_src>
import jax
import jax.numpy as jnp
from jax.experimental import pallas as pl
from jax.experimental.pallas import tpu as pltpu


# --------------------------------------------------------------------------- #
# Kernels
# --------------------------------------------------------------------------- #

def _residual2_kernel(x_ref, x2_ref, w_ref, b_ref, o_ref):
    """W fully VMEM-resident.  fn(x, x2) = x2 @ W + b; Residual2 adds x."""
    y = jnp.dot(x2_ref[...], w_ref[...], preferred_element_type=jnp.float32)
    o_ref[...] = (y + b_ref[...] + x_ref[...].astype(jnp.float32)).astype(o_ref.dtype)


def _residual2_kernel_ksplit(x_ref, x2_ref, w_ref, b_ref, o_ref, acc_ref):
    """W streamed over the contraction dim; f32 accumulator lives in VMEM."""
    k = pl.program_id(1)

    @pl.when(k == 0)
    def _init():
        acc_ref[...] = jnp.zeros_like(acc_ref)

    acc_ref[...] += jnp.dot(x2_ref[...], w_ref[...],
                            preferred_element_type=jnp.float32)

    @pl.when(k == pl.num_programs(1) - 1)
    def _finalize():
        y = acc_ref[...] + b_ref[...] + x_ref[...].astype(jnp.float32)
        o_ref[...] = y.astype(o_ref.dtype)


# --------------------------------------------------------------------------- #
# Sizing helpers
# --------------------------------------------------------------------------- #

def _round_up(x, m):
    return (x + m - 1) // m * m


def _sublane_multiple(dtype):
    # sub-32-bit dtypes pack along sublanes: 8 rows (f32), 16 (bf16), 32 (int8/fp8)
    return max(8, 32 // jnp.dtype(dtype).itemsize)


def _vmem_capacity_bytes():
    try:
        return int(pltpu.get_tpu_info().vmem_capacity_bytes)
    except Exception:
        return 64 << 20            # conservative fallback (v7x per-TC VMEM)


def _vmem_budgets():
    """(tile-sizing budget, cap for vmem_limit_bytes) - generation aware."""
    cap = _vmem_capacity_bytes()
    if cap >= (96 << 20):                        # v5e / v6e: 128 MiB physical
        return cap // 2, 100 << 20
    return int(cap * 0.6), int(cap * 0.75)       # v7x: 64 MiB per TensorCore


def _resident_spec(block_shape, index_map):
    """Constant-index operand: request single buffering (2nd buffer is waste)."""
    try:
        return pl.BlockSpec(block_shape, index_map,
                            pipeline_mode=pl.Buffered(1)), 1
    except Exception:       # older API: fall back to default double buffering
        return pl.BlockSpec(block_shape, index_map), 2


# --------------------------------------------------------------------------- #
# Wrapper
# --------------------------------------------------------------------------- #

def residual2(x, x2, w, b, *, tile_m=None, k_block=None):
    """out = (x2 @ w + b) + x,  x, x2: (B, N, D), w: (D, D), b: (D,)."""
    B, N, D = x.shape
    assert x2.shape == (B, N, D) and w.shape == (D, D) and b.shape == (D,)

    out_dtype = x.dtype
    in_itemsize = jnp.dtype(x.dtype).itemsize
    w_itemsize = jnp.dtype(w.dtype).itemsize
    sublane = _sublane_multiple(x.dtype)

    M = B * N
    Dp = _round_up(D, 128)          # lane-dense output -> unmasked vector stores

    # Flatten (free, contiguous) and pad the feature dim ONLY when needed.
    x_flat = x.reshape(M, D)
    x2_flat = x2.reshape(M, D)
    b_row = b.reshape(1, D)
    w_mat = w
    if Dp != D:
        # Padded cols feed zeros through matmul/bias/residual; sliced off below.
        x_flat = jnp.pad(x_flat, ((0, 0), (0, Dp - D)))
        x2_flat = jnp.pad(x2_flat, ((0, 0), (0, Dp - D)))
        w_mat = jnp.pad(w_mat, ((0, Dp - D), (0, Dp - D)))
        b_row = jnp.pad(b_row, ((0, 0), (0, Dp - D)))
    # NOTE: the row dim is NOT padded; grid uses cdiv(M, tile_m) and Pallas
    # drops the out-of-range writes of the ragged last block.

    budget, limit_cap = _vmem_budgets()
    w_bytes = Dp * Dp * w_itemsize
    b_bytes = Dp * w_itemsize

    # Decide whether W can stay VMEM-resident or must be streamed over K.
    use_ksplit = (k_block is not None and k_block < Dp) or (w_bytes > budget // 3)

    if use_ksplit:
        if k_block is None:
            # W blocks (double-buffered) should use at most ~1/3 of the budget.
            kb_max = max(128, (budget // (6 * Dp * w_itemsize)) // 128 * 128)
            k_block = min(512, kb_max, Dp)
            while Dp % k_block != 0:
                k_block -= 128
        assert k_block % 128 == 0 and Dp % k_block == 0
        # Working set: x/out tiles (Dp wide) + x2 tile (k_block wide), all
        # double-buffered; W blocks double-buffered; b resident; f32 acc.
        per_row = (2 * 2 * Dp + 2 * k_block) * in_itemsize + Dp * 4
        resident = 2 * k_block * Dp * w_itemsize + b_bytes
    else:
        # Working set: x, x2, out tiles double-buffered + resident W, b.
        per_row = 3 * 2 * Dp * in_itemsize
        resident = w_bytes + b_bytes

    if tile_m is None:
        avail = budget - resident
        t = avail // per_row if avail > 0 else 0
        t = (t // sublane) * sublane
        # Keep >= ~4 row steps so the "parallel" axis can shard across both
        # v7x TensorCores and there is something left to pipeline.
        t = min(t, max(_round_up(pl.cdiv(M, 4), sublane), sublane))
        t = min(t, 2048)
        tile_m = max(t, sublane)
    tile_m = int(max(sublane,
                     _round_up(min(int(tile_m), _round_up(M, sublane)), sublane)))

    num_row_tiles = pl.cdiv(M, tile_m)

    if use_ksplit:
        nk = Dp // k_block
        grid = (num_row_tiles, nk)
        b_spec, b_bufs = _resident_spec((1, Dp), lambda i, k: (0, 0))
        in_specs = [
            pl.BlockSpec((tile_m, Dp), lambda i, k: (i, 0)),        # x (per row tile)
            pl.BlockSpec((tile_m, k_block), lambda i, k: (i, k)),   # x2
            pl.BlockSpec((k_block, Dp), lambda i, k: (k, 0)),       # W streamed
            b_spec,                                                 # b
        ]
        out_spec = pl.BlockSpec((tile_m, Dp), lambda i, k: (i, 0))
        scratch = [pltpu.VMEM((tile_m, Dp), jnp.float32)]
        kernel = _residual2_kernel_ksplit
        dim_sem = ("parallel", "arbitrary")
        needed = ((2 * 2 * Dp + 2 * k_block) * tile_m * in_itemsize
                  + 2 * k_block * Dp * w_itemsize + b_bufs * b_bytes
                  + tile_m * Dp * 4)
    else:
        grid = (num_row_tiles,)
        w_spec, w_bufs = _resident_spec((Dp, Dp), lambda i: (0, 0))
        b_spec, b_bufs = _resident_spec((1, Dp), lambda i: (0, 0))
        in_specs = [
            pl.BlockSpec((tile_m, Dp), lambda i: (i, 0)),           # x
            pl.BlockSpec((tile_m, Dp), lambda i: (i, 0)),           # x2
            w_spec,                                                 # W (resident)
            b_spec,                                                 # b (resident)
        ]
        out_spec = pl.BlockSpec((tile_m, Dp), lambda i: (i, 0))
        scratch = []
        kernel = _residual2_kernel
        dim_sem = ("parallel",)
        needed = (3 * 2 * tile_m * Dp * in_itemsize
                  + w_bufs * w_bytes + b_bufs * b_bytes)

    # vmem limit: actual working set + headroom (covers single-buffer request
    # being ignored), never below what is strictly needed.
    vmem_limit = int(min(limit_cap, needed + w_bytes + b_bytes + (4 << 20)))
    vmem_limit = int(max(vmem_limit, needed + (1 << 20), 16 << 20))

    cost = pl.CostEstimate(
        flops=int(2 * M * Dp * Dp + 2 * M * Dp),
        transcendentals=0,
        bytes_accessed=int(3 * M * Dp * in_itemsize + w_bytes + b_bytes),
    )

    # Alias x -> out on the hot (no feature pad) path: no extra HBM output buffer.
    io_aliases = {0: 0} if (Dp == D and x_flat.dtype == out_dtype) else {}

    out_flat = pl.pallas_call(
        kernel,
        out_shape=jax.ShapeDtypeStruct((M, Dp), out_dtype),
        grid_spec=pltpu.PrefetchScalarGridSpec(
            num_scalar_prefetch=0,
            grid=grid,
            in_specs=in_specs,
            out_specs=out_spec,
            scratch_shapes=scratch,
        ),
        compiler_params=pltpu.CompilerParams(
            dimension_semantics=dim_sem,
            vmem_limit_bytes=vmem_limit,
        ),
        cost_estimate=cost,
        input_output_aliases=io_aliases,
    )(x_flat, x2_flat, w_mat, b_row)

    if Dp != D:
        out_flat = out_flat[:, :D]
    return out_flat.reshape(B, N, D)


# --------------------------------------------------------------------------- #
# Self-test
# --------------------------------------------------------------------------- #

if __name__ == "__main__":
    key = jax.random.PRNGKey(0)

    # Case 1: D not a multiple of 128 (guarded feature pad) + ragged row tiles.
    B, N, D = 2, 100, 32
    kx, kx2, kw, kb, key = jax.random.split(key, 5)
    x = jax.random.normal(kx, (B, N, D), dtype=jnp.float32)
    x2 = jax.random.normal(kx2, (B, N, D), dtype=jnp.float32)
    w = jax.random.normal(kw, (D, D), dtype=jnp.float32) * 0.05
    b = jax.random.normal(kb, (D,), dtype=jnp.float32) * 0.01

    ref = (jnp.einsum("bnd,de->bne", x2, w) + b) + x
    out = jax.block_until_ready(residual2(x, x2, w, b))
    assert out.shape == (B, N, D)
    assert jnp.allclose(out, ref, atol=1e-5, rtol=1e-5)

    # Case 2: lane-aligned D (no pad, aliased x->out), auto row tiling, ragged M.
    B2, N2, D2 = 2, 120, 256
    kx, kx2, kw, kb, key = jax.random.split(key, 5)
    xa = jax.random.normal(kx, (B2, N2, D2), dtype=jnp.float32)
    xa2 = jax.random.normal(kx2, (B2, N2, D2), dtype=jnp.float32)
    wa = jax.random.normal(kw, (D2, D2), dtype=jnp.float32) * 0.02
    ba = jax.random.normal(kb, (D2,), dtype=jnp.float32) * 0.01

    ref_a = (jnp.einsum("bnd,de->bne", xa2, wa) + ba) + xa
    out_a = jax.block_until_ready(residual2(xa, xa2, wa, ba))
    assert out_a.shape == (B2, N2, D2)
    assert jnp.allclose(out_a, ref_a, atol=1e-3, rtol=1e-3)

    # Case 3: force the K-split (streaming-W, f32 accumulator) path.
    out_k = jax.block_until_ready(residual2(xa, xa2, wa, ba, k_block=128))
    assert jnp.allclose(out_k, ref_a, atol=1e-3, rtol=1e-3)

    print("KERNEL_OK")
</pallas_src>

<mosaic_0001>
module attributes {stable_mosaic.version = 11 : i64} {
  func.func @_residual2_kernel(%arg0: i32, %arg1: memref<56x128xf32, #tpu.memory_space<vmem>>, %arg2: memref<56x128xf32, #tpu.memory_space<vmem>>, %arg3: memref<128x128xf32, #tpu.memory_space<vmem>>, %arg4: memref<1x128xf32, #tpu.memory_space<vmem>>, %arg5: memref<56x128xf32, #tpu.memory_space<vmem>>) attributes {dimension_semantics = [#tpu.dimension_semantics<parallel>], iteration_bounds = array<i64: 4>, scalar_prefetch = 0 : i64, scratch_operands = 0 : i64, tpu.core_type = #tpu.core_type<tc>, window_params = [{transform_indices = @transform_0, window_bounds = array<i64: 56, 128>}, {transform_indices = @transform_1, window_bounds = array<i64: 56, 128>}, {pipeline_mode = #tpu.pipeline_mode<synchronous>, transform_indices = @transform_2, window_bounds = array<i64: 128, 128>}, {pipeline_mode = #tpu.pipeline_mode<synchronous>, transform_indices = @transform_3, window_bounds = array<i64: 1, 128>}, {transform_indices = @transform_4, window_bounds = array<i64: 56, 128>}]} {
    %c0 = arith.constant 0 : index
    %c0_0 = arith.constant 0 : index
    %0 = vector.load %arg2[%c0, %c0_0] : memref<56x128xf32, #tpu.memory_space<vmem>>, vector<56x128xf32>
    %c0_1 = arith.constant 0 : index
    %c0_2 = arith.constant 0 : index
    %1 = vector.load %arg3[%c0_1, %c0_2] : memref<128x128xf32, #tpu.memory_space<vmem>>, vector<128x128xf32>
    %cst = arith.constant dense<0.000000e+00> : vector<56x128xf32>
    %2 = tpu.matmul %0, %1, %cst {dimension_numbers = #tpu.dot_dimension_numbers<[1], [0], [0], [1], [0, 0, 1, 1], [], []>} : vector<56x128xf32>, vector<128x128xf32>, vector<56x128xf32> -> vector<56x128xf32>
    %c0_3 = arith.constant 0 : index
    %c0_4 = arith.constant 0 : index
    %3 = vector.load %arg4[%c0_3, %c0_4] : memref<1x128xf32, #tpu.memory_space<vmem>>, vector<1x128xf32>
    %4 = vector.broadcast %3 : vector<1x128xf32> to vector<56x128xf32>
    %5 = arith.addf %2, %4 : vector<56x128xf32>
    %c0_5 = arith.constant 0 : index
    %c0_6 = arith.constant 0 : index
    %6 = vector.load %arg1[%c0_5, %c0_6] : memref<56x128xf32, #tpu.memory_space<vmem>>, vector<56x128xf32>
    %7 = arith.addf %5, %6 : vector<56x128xf32>
    %c0_7 = arith.constant 0 : index
    %c0_8 = arith.constant 0 : index
    %8 = vector.load %arg5[%c0_7, %c0_8] : memref<56x128xf32, #tpu.memory_space<vmem>>, vector<56x128xf32>
    tpu.vector_store %arg5[%c0_7, %c0_8], %7 {strides = array<i32>} : memref<56x128xf32, #tpu.memory_space<vmem>>, vector<56x128xf32>,
    return
  }
  func.func @transform_0(%arg0: i32) -> (i32, i32) {
    %c0_i32 = arith.constant 0 : i32
    %c0_i32_0 = arith.constant 0 : i32
    return %arg0, %c0_i32 : i32, i32
  }
  func.func @transform_1(%arg0: i32) -> (i32, i32) {
    %c0_i32 = arith.constant 0 : i32
    %c0_i32_0 = arith.constant 0 : i32
    return %arg0, %c0_i32 : i32, i32
  }
  func.func @transform_2(%arg0: i32) -> (i32, i32) {
    %c0_i32 = arith.constant 0 : i32
    %c0_i32_0 = arith.constant 0 : i32
    %c0_i32_1 = arith.constant 0 : i32
    return %c0_i32, %c0_i32_0 : i32, i32
  }
  func.func @transform_3(%arg0: i32) -> (i32, i32) {
    %c0_i32 = arith.constant 0 : i32
    %c0_i32_0 = arith.constant 0 : i32
    %c0_i32_1 = arith.constant 0 : i32
    return %c0_i32, %c0_i32_0 : i32, i32
  }
  func.func @transform_4(%arg0: i32) -> (i32, i32) {
    %c0_i32 = arith.constant 0 : i32
    %c0_i32_0 = arith.constant 0 : i32
    return %arg0, %c0_i32 : i32, i32
  }
}

</mosaic_0001>

<bundles_post_ra>
// kernel: tpu_custom_call.1
= control target key start
LH: loop header
LB: loop body
LE: loop exit
PB: predicated region body
PF: predicated region fallthrough
CT: control target
= control target key end

     0   :  { %s1172_s0 = inlined_call_operand.hbm [shape: f32[200,128], index: 0, kind: input, shape index: {}]   ;;  %s1173_s1 = inlined_call_operand.hbm [shape: f32[200,128], index: 1, kind: input, shape index: {}]   ;;  %s1174_s2 = inlined_call_operand.hbm [shape: f32[128,128], index: 2, kind: input, shape index: {}]   ;;  %s1175_s3 = inlined_call_operand.vmem [shape: f32[1,128], index: 3, kind: input, shape index: {}]   ;;  %s1176_s4 = inlined_call_operand.hbm [shape: f32[200,128], index: 4, kind: output, shape index: {}]  }
   0x1   :  { %1178 = sst [smem:[#allocation14_spill]] %s1174_s2 }
   0x2   :  { %9 = vsyncpa [#allocation3], 0 }
   0x3   :  { %11 = vsyncpa [#allocation3 + $0x1], 0 }
   0x4   :  { %12 = vsyncpa [#allocation6], 0 }
   0x5   :  { %14 = vsyncpa [#allocation6 + $0x1], 0 }
   0x6   :  { %15 = vsyncpa [#allocation4], 0 }
   0x7   :  { %17 = vsyncpa [#allocation4 + $0x1], 0  ;;  %s888_s15 = smov 0   ;;  %s890_s16 = smov 0  }
   0x8   :  { %s892_s17 = smov 0   ;;  %s894_s18 = smov 0  }
   0x9 LB: > { %s909_s19 = sadd.s32 4294967295, %s849_s18   ;;  %s519_s20 = sadd.s32 4294967294, %s849_s18   ;;  %s849_s18 = sphi %s894_s18, %s1197_s18   ;;  %s845_s17 = sphi %s892_s17, %s1196_s17   ;;  %s841_s16 = sphi %s890_s16, %s1195_s16   ;;  %s837_s15 = sphi %s888_s15, %s1194_s15  }
   0xa   : > { %s913_s21 = sadd.s32 1, %s849_s18   ;;  %s30_s22 = sadd.s32 1, %s845_s17 }
   0xb   : > { %s27_s23 = ssub.s32 %s849_s18, %s913_s21  ;;  %p37_p0 = scmp.ne.s32.totalorder %s845_s17, %s841_s16 }
   0xc   : > { %p28_p1 = scmp.eq.s32.totalorder %s27_s23, 0  ;;  %p38_p2 = scmp.eq.s32.totalorder %s849_s18, 0 }
   0xd   : > { %p43_p3 = scmp.ne.s32.totalorder %s841_s16, %s837_s15  ;;  %p1177_p4 = scmp.eq.s32.totalorder %s909_s19, 0 }
   0xe   : > { %s925_s24 = scalar_select %p28_p1, %s845_s17, %s30_s22  }
   0xf   : > { %p927_p5 = por %p38_p2, %p37_p0  ;;  %p933_p6 = por %p1177_p4, %p43_p3 }
  0x10   : > { %1179 = sst [smem:[#allocation13_spill]] %s925_s24  ;;  %p135_p7 = scmp.eq.s32.totalorder %s909_s19, 3 }
  0x11   : > { %p141_p8 = scmp.eq.s32.totalorder %s519_s20, 3  ;;  %p520_p9 = scmp.ge.s32.totalorder %s849_s18, 1 }
  0x12   : > { %p148_p10 = scmp.lt.s32.totalorder %s849_s18, 5  ;;  %p940_p11 = por %p135_p7, %p37_p0 }
  0x13   : > { %p944_p12 = por %p141_p8, %p43_p3  ;;  %s1185_s2 = sld [smem:[#allocation14_spill]] }
  0x14   : > { %s1182_s27 = scalar_select %p940_p11, 1, 0 }
  0x15   : > { %s1183_s28 = scalar_select %p944_p12, 1, 0 }
  0x16   : > { %p948_p13 = pnand %p520_p9, %p148_p10  ;;  %s851_s7 = smov [#allocation7]  }
  0x17   : > { %s161_s8 = sshll.u32 %s851_s7, 4  ;;  %s852_s9 = smov 128   ;;  %s162_s8 = int_to_ptr.vmem [resolvable:$true] %s161_s8 }
  0x18   : > { %p603_p1 = pneg %p948_p13  ;;  %s853_s10 = smov 8  }
  0x19   : > { %s159_s6 = sshll.u32 %s1185_s2, 4  ;;  %p522_p2 = scmp.ge.s32.totalorder %s849_s18, 4  ;;  %s160_s6 = int_to_ptr.hbm [resolvable:$true] %s159_s6 }
  0x1a   : > { %p604_p0 = pnand %p603_p1, %p1177_p4 }
  0x1b   : > { %174 = sbr.rel (%p522_p2) target bundleno = 108 (0x6c), region = 24 }
  0x1c   : > { %606 = dma.hbm_to_vmem [thread:$0]  (!%p604_p0), %s160_s6, 2048, %s162_s8, [#allocation6], %s852_s9, %s852_s9, %s853_s10  }
  0x20   : > { %177 = sbr.rel (!%p927_p5) target bundleno = 70 (0x46), region = 28  ;;  %s178_s11 = sand.u32 (%p927_p5), 1, %s845_s17  }
  0x21   : > { %s183_s12 = smul.u32 (%p927_p5), 7, %s849_s18  ;;  %s967_s30 = scalar_lea.sflag (%p927_p5), [#allocation3], %s178_s11 }
  0x22   : > { %s593_s13 = smul.u32 (%p927_p5), 56, %s178_s11 }
  0x23   : > { %s184_s14 = ssub.s32 (%p927_p5), 25, %s183_s12 }
  0x24   : > { %p185_p3 = scmp.lt.s32.totalorder (%p927_p5), %s184_s14, 7  ;;  %s182_s5 = scalar_lea.vmem (%p927_p5), [#allocation2], %s593_s13 }
  0x26   : > { %s1199_s14 = smov (!%p185_p3, %s184_s14), 7 }
  0x27   : > { %s523_s20 = sshll.u32 %s1199_s14, 3 }
  0x28   : > { %s188_s22 = ssub.s32 56, %s523_s20 }
  0x29   : > { %s189_s23 = sshll.u32 %s188_s22, 4 }
  0x2a   : > { %190 = vsyncadd %s967_s30, %s189_s23  ;;  %p970_p7 = scmp.ne.s32.totalorder %s523_s20, 0  ;;  %s542_s7 = smul.u32 56, %s849_s18 }
  0x2b   : > { %s975_s8 = sshll.u32 %s182_s5, 4  ;;  %s527_s9 = sshll.u32 %s1199_s14, 7  ;;  %s198_s8 = int_to_ptr.vmem [resolvable:$true] %s975_s8 }
  0x2c   : > { %s193_s11 = scalar_lea.hbm %s1172_s0, %s542_s7  ;;  %s688_s20 = sshrl.u32 %s527_s9, 4 }
  0x2d   : > { %s195_s13 = sshll.u32 %s193_s11, 4  ;;  %s697_s24 = scalar_lea.hbm %s1172_s0, 200  ;;  %s982_s13 = int_to_ptr.hbm [resolvable:$true] %s195_s13 }
  0x2e   : > { %s686_s22 = sshra.s32 %s982_s13, 4  ;;  %s687_s22 = int_to_ptr.hbm [resolvable:$true] %s686_s22 }
  0x2f   : > { %s693_s23 = scalar_lea.hbm %s687_s22, %s688_s20  ;;  %p698_p1 = scmp.lt.s32.totalorder %s687_s22, %s1172_s0 }
  0x30   : > { %p694_p8 = scmp.ne.s32.totalorder %s687_s22, %s693_s23  ;;  %p699_p0 = scmp.lt.s32.totalorder %s697_s24, %s693_s23 }
  0x32   : > { %p695_p9 = pnand %p694_p8, %p970_p7  ;;  %p700_p2 = por %p699_p0, %p698_p1 }
  0x34   : > { %p696_p10 = pneg %p695_p9 }
  0x36   : > { %p701_p3 = pnand %p700_p2, %p696_p10 }
  0x38   : > { %704 = shalt.err (!%p701_p3)
}
  0x39   : > { %s705_s12 = sshra.s32 %s198_s8, 4  ;;  %s854_s2 = smov [#allocation2]   ;;  %s706_s12 = int_to_ptr.vmem [resolvable:$true] %s705_s12 }
  0x3a   : > { %s712_s11 = scalar_lea.vmem %s706_s12, %s688_s20  ;;  %s716_s5 = scalar_lea.vmem %s854_s2, 112 }
  0x3b   : > { %p713_p8 = scmp.ne.s32.totalorder %s706_s12, %s712_s11  ;;  %p718_p12 = scmp.lt.s32.totalorder %s716_s5, %s712_s11 }
  0x3d   : > { %p714_p9 = pnand %p713_p8, %p970_p7 }
  0x3f   : > { %p715_p4 = pneg %p714_p9 }
  0x41   : > { %p720_p11 = pnand %p718_p12, %p715_p4 }
  0x43   : > { %723 = shalt.err (!%p720_p11)
}
  0x44   : > { %s855_s22 = smov 128   ;;  %s856_s24 = smov 8  }
  0x45   : > { %203 = dma.hbm_to_vmem [thread:$0]  (%p970_p7), %s982_s13, %s527_s9, %s198_s8, %s967_s30, %s855_s22, %s855_s22, %s856_s24  }
  0x46 PF: > { %206 = sbr.rel (!%p927_p5) target bundleno = 108 (0x6c), region = 32  ;;  %s207_s20 = sand.u32 (%p927_p5), 1, %s849_s18  }
  0x47   : > { %s209_s23 = sand.u32 (%p927_p5), 1, %s845_s17   ;;  %s212_s7 = smul.u32 (%p927_p5), 7, %s849_s18 }
  0x48   : > { %s594_s10 = smul.u32 (%p927_p5), 56, %s209_s23  ;;  %s1015_s30 = scalar_lea.sflag (%p927_p5), [#allocation6], %s207_s20 }
  0x49   : > { %s213_s12 = ssub.s32 (%p927_p5), 25, %s212_s7 }
  0x4a   : > { %p214_p4 = scmp.lt.s32.totalorder (%p927_p5), %s213_s12, 7  ;;  %s211_s25 = scalar_lea.vmem (%p927_p5), [#allocation5], %s594_s10 }
  0x4c   : > { %s1201_s12 = smov (!%p214_p4, %s213_s12), 7 }
  0x4d   : > { %s528_s6 = sshll.u32 %s1201_s12, 3 }
  0x4e   : > { %s217_s11 = ssub.s32 56, %s528_s6 }
  0x4f   : > { %s218_s14 = sshll.u32 %s217_s11, 4 }
  0x50   : > { %219 = vsyncadd %s1015_s30, %s218_s14  ;;  %p1018_p5 = scmp.ne.s32.totalorder %s528_s6, 0  ;;  %s543_s9 = smul.u32 56, %s849_s18 }
  0x51   : > { %s1023_s13 = sshll.u32 %s211_s25, 4  ;;  %s532_s2 = sshll.u32 %s1201_s12, 7  ;;  %s227_s13 = int_to_ptr.vmem [resolvable:$true] %s1023_s13 }
  0x52   : > { %s222_s24 = scalar_lea.hbm %s1173_s1, %s543_s9  ;;  %s727_s10 = sshrl.u32 %s532_s2, 4 }
  0x53   : > { %s224_s20 = sshll.u32 %s222_s24, 4  ;;  %s736_s14 = scalar_lea.hbm %s1173_s1, 200  ;;  %s1030_s20 = int_to_ptr.hbm [resolvable:$true] %s224_s20 }
  0x54   : > { %s725_s23 = sshra.s32 %s1030_s20, 4  ;;  %s726_s23 = int_to_ptr.hbm [resolvable:$true] %s725_s23 }
  0x55   : > { %s732_s7 = scalar_lea.hbm %s726_s23, %s727_s10  ;;  %p737_p10 = scmp.lt.s32.totalorder %s726_s23, %s1173_s1 }
  0x56   : > { %p733_p11 = scmp.ne.s32.totalorder %s726_s23, %s732_s7  ;;  %p738_p1 = scmp.lt.s32.totalorder %s736_s14, %s732_s7 }
  0x58   : > { %p734_p12 = pnand %p733_p11, %p1018_p5  ;;  %p739_p0 = por %p738_p1, %p737_p10 }
  0x5a   : > { %p735_p7 = pneg %p734_p12 }
  0x5c   : > { %p740_p2 = pnand %p739_p0, %p735_p7 }
  0x5e   : > { %743 = shalt.err (!%p740_p2)
}
  0x5f   : > { %s744_s5 = sshra.s32 %s227_s13, 4  ;;  %s857_s24 = smov [#allocation5]   ;;  %s745_s5 = int_to_ptr.vmem [resolvable:$true] %s744_s5 }
  0x60   : > { %s751_s22 = scalar_lea.vmem %s745_s5, %s727_s10  ;;  %s755_s6 = scalar_lea.vmem %s857_s24, 112 }
  0x61   : > { %p752_p3 = scmp.ne.s32.totalorder %s745_s5, %s751_s22  ;;  %p757_p4 = scmp.lt.s32.totalorder %s755_s6, %s751_s22 }
  0x63   : > { %p753_p8 = pnand %p752_p3, %p1018_p5 }
  0x65   : > { %p754_p9 = pneg %p753_p8 }
  0x67   : > { %p759_p11 = pnand %p757_p4, %p754_p9 }
  0x69   : > { %762 = shalt.err (!%p759_p11)
}
  0x6a   : > { %s858_s23 = smov 128   ;;  %s859_s7 = smov 8  }
  0x6b   : > { %232 = dma.hbm_to_vmem [thread:$0]  (%p1018_p5), %s1030_s20, %s532_s2, %s227_s13, %s1015_s30, %s858_s23, %s858_s23, %s859_s7  }
  0x6c PF: > { %238 = sbr.rel (%p948_p13) target bundleno = 329 (0x149), region = 36  ;;  %s1058_s10 = sand.u32 (!%p948_p13), 1, %s841_s16  }
  0x6d   : > { %s1061_s11 = smul.u32 (!%p948_p13), 56, %s1058_s10  ;;  %s241_s14 = scalar_lea.sflag (!%p948_p13), [#allocation3], %s1058_s10 }
  0x6f   : > { %s1065_s25 = scalar_lea.vmem (!%p948_p13), [#allocation2], %s1061_s11 }
  0x71   : > { %820 = dma.done.wait (%p933_p6), %s241_s14, 896  }
  0x72   : > { %822 = vsyncadd (%p933_p6), %s241_s14, 4294966400  ;;  %s250_s29 = sand.u32 1, %s909_s19   ;;  %s1073_s30 = scalar_lea.vmem [#allocation5], %s1061_s11 }
  0x73   : > { %s251_s12 = scalar_lea.sflag [#allocation6], %s250_s29 }
  0x74   : > { %824 = dma.done.wait (%p933_p6), %s251_s12, 896  }
  0x75   : > { %826 = vsyncadd (%p933_p6), %s251_s12, 4294966400  ;;  %p1188_p13 = scmp.eq.s32.totalorder %s909_s19, 0 }
  0x77   : > { %828 = dma.done.wait (%p1188_p13), [#allocation6], 2048   ;;  %p1189_p5 = pmov %p1188_p13 }
  0x78   : > { %v327_v0 = vld [vmem:[#allocation7 + $0x78] sm:$0xff]  ;;  %v326_v1 = vld [vmem:[#allocation7 + $0x70] sm:$0xff]  ;;  %v325_v2 = vld [vmem:[#allocation7 + $0x68] sm:$0xff]  ;;  %s1098_s13 = scalar_lea.vmem [#allocation8], %s1061_s11  ;;  %s392_s2 = scalar_lea.sflag [#allocation4], %s1058_s10 }
  0x79   : > { %830 = vsyncadd (%p1189_p5), [#allocation6], 4294965248  ;;  %546 = vmatpush.msra.mxu2 %v327_v0  ;;  %547 = vmatpush.msra.mxu3 %v327_v0  ;;  %v324_v3 = vld [vmem:[#allocation7 + $0x60] sm:$0xff]  ;;  %v323_v4 = vld [vmem:[#allocation7 + $0x58] sm:$0xff]  ;;  %p1190_p6 = scmp.ne.s32.totalorder %s1182_s27, 0 }
  0x7a   : > { %332 = vmatpush.msra.mxu0 %v327_v0  ;;  %545 = vmatpush.msra.mxu1 %v327_v0  ;;  %v322_v5 = vld [vmem:[#allocation7 + $0x50] sm:$0xff]  ;;  %v321_v6 = vld [vmem:[#allocation7 + $0x48] sm:$0xff]  ;;  %v320_v7 = vld [vmem:[#allocation7 + $0x40] sm:$0xff]  ;;  %s399_s20 = smul.u32 (%p1190_p6), 7, %s909_s19 }
  0x7b   : > { %549 = vmatpush.msra.mxu2 %v326_v1  ;;  %550 = vmatpush.msra.mxu3 %v326_v1  ;;  %v319_v8 = vld [vmem:[#allocation7 + $0x38] sm:$0xff]  ;;  %v318_v9 = vld [vmem:[#allocation7 + $0x30] sm:$0xff]  ;;  %v317_v10 = vld [vmem:[#allocation7 + $0x28] sm:$0xff] }
  0x7c   : > { %333 = vmatpush.msra.mxu0 %v326_v1  ;;  %548 = vmatpush.msra.mxu1 %v326_v1  ;;  %v316_v11 = vld [vmem:[#allocation7 + $0x20] sm:$0xff]  ;;  %v315_v12 = vld [vmem:[#allocation7 + $0x18] sm:$0xff]  ;;  %v314_v13 = vld [vmem:[#allocation7 + $0x10] sm:$0xff]  ;;  %s400_s9 = ssub.s32 (%p1190_p6), 25, %s399_s20 }
  0x7d   : > { %552 = vmatpush.msra.mxu2 %v325_v2  ;;  %553 = vmatpush.msra.mxu3 %v325_v2  ;;  %v313_v14 = vld [vmem:[#allocation7 + $0x8] sm:$0xff]  ;;  %v312_v15 = vld [vmem:[#allocation7] sm:$0xff]  ;;  %v310_v17 = vld [vmem:[%s1073_s30 + $0x28] sm:$0xff]  ;;  %p401_p12 = scmp.lt.s32.totalorder (%p1190_p6), %s400_s9, 7 }
  0x7e   : > { %334 = vmatpush.msra.mxu0 %v325_v2  ;;  %551 = vmatpush.msra.mxu1 %v325_v2  ;;  %v308_v16 = vld [vmem:[%s1073_s30 + $0x18] sm:$0xff]  ;;  %v305_v18 = vld [vmem:[%s1073_s30] sm:$0xff]  ;;  %v307_v19 = vld [vmem:[%s1073_s30 + $0x10] sm:$0xff] }
  0x7f   : > { %555 = vmatpush.msra.mxu2 %v324_v3  ;;  %556 = vmatpush.msra.mxu3 %v324_v3  ;;  %v309_v20 = vld [vmem:[%s1073_s30 + $0x20] sm:$0xff]  ;;  %v311_v21 = vld [vmem:[%s1073_s30 + $0x30] sm:$0xff]  ;;  %v306_v22 = vld [vmem:[%s1073_s30 + $0x8] sm:$0xff] }
  0x80   : > { %335 = vmatpush.msra.mxu0 %v324_v3  ;;  %554 = vmatpush.msra.mxu1 %v324_v3  ;;  %v655_v23 = vld [vmem:[%s1175_s3] ss:$0 sm:$0xff]  ;;  %v372_v27 = vld [vmem:[%s1065_s25 + $0x10] sm:$0xff]  ;;  %v373_v33 = vld [vmem:[%s1065_s25 + $0x18] sm:$0xff] }
  0x81   : > { %558 = vmatpush.msra.mxu2 %v323_v4  ;;  %559 = vmatpush.msra.mxu3 %v323_v4  ;;  %v370_v25 = vld [vmem:[%s1065_s25] sm:$0xff]  ;;  %v375_v35 = vld [vmem:[%s1065_s25 + $0x28] sm:$0xff]  ;;  %v376_v47 = vld [vmem:[%s1065_s25 + $0x30] sm:$0xff] }
  0x82   : > { %336 = vmatpush.msra.mxu0 %v323_v4  ;;  %557 = vmatpush.msra.mxu1 %v323_v4  ;;  %v371_v41 = vld [vmem:[%s1065_s25 + $0x8] sm:$0xff]  ;;  %v374_v45 = vld [vmem:[%s1065_s25 + $0x20] sm:$0xff] }
  0x83   : > { %561 = vmatpush.msra.mxu2 %v322_v5  ;;  %562 = vmatpush.msra.mxu3 %v322_v5 }
  0x84   : > { %337 = vmatpush.msra.mxu0 %v322_v5  ;;  %560 = vmatpush.msra.mxu1 %v322_v5 }
  0x85   : > { %564 = vmatpush.msra.mxu2 %v321_v6  ;;  %565 = vmatpush.msra.mxu3 %v321_v6 }
  0x86   : > { %338 = vmatpush.msra.mxu0 %v321_v6  ;;  %563 = vmatpush.msra.mxu1 %v321_v6 }
  0x87   : > { %567 = vmatpush.msra.mxu2 %v320_v7  ;;  %568 = vmatpush.msra.mxu3 %v320_v7 }
  0x88   : > { %339 = vmatpush.msra.mxu0 %v320_v7  ;;  %566 = vmatpush.msra.mxu1 %v320_v7 }
  0x89   : > { %570 = vmatpush.msra.mxu2 %v319_v8  ;;  %571 = vmatpush.msra.mxu3 %v319_v8 }
  0x8a   : > { %340 = vmatpush.msra.mxu0 %v319_v8  ;;  %569 = vmatpush.msra.mxu1 %v319_v8 }
  0x8b   : > { %573 = vmatpush.msra.mxu2 %v318_v9  ;;  %574 = vmatpush.msra.mxu3 %v318_v9 }
  0x8c   : > { %341 = vmatpush.msra.mxu0 %v318_v9  ;;  %572 = vmatpush.msra.mxu1 %v318_v9 }
  0x8d   : > { %576 = vmatpush.msra.mxu2 %v317_v10  ;;  %577 = vmatpush.msra.mxu3 %v317_v10 }
  0x8e   : > { %342 = vmatpush.msra.mxu0 %v317_v10  ;;  %575 = vmatpush.msra.mxu1 %v317_v10 }
  0x8f   : > { %579 = vmatpush.msra.mxu2 %v316_v11  ;;  %580 = vmatpush.msra.mxu3 %v316_v11 }
  0x90   : > { %343 = vmatpush.msra.mxu0 %v316_v11  ;;  %578 = vmatpush.msra.mxu1 %v316_v11 }
  0x91   : > { %582 = vmatpush.msra.mxu2 %v315_v12  ;;  %583 = vmatpush.msra.mxu3 %v315_v12 }
  0x92   : > { %344 = vmatpush.msra.mxu0 %v315_v12  ;;  %581 = vmatpush.msra.mxu1 %v315_v12 }
  0x93   : > { %585 = vmatpush.msra.mxu2 %v314_v13  ;;  %586 = vmatpush.msra.mxu3 %v314_v13 }
  0x94   : > { %345 = vmatpush.msra.mxu0 %v314_v13  ;;  %584 = vmatpush.msra.mxu1 %v314_v13 }
  0x95   : > { %588 = vmatpush.msra.mxu2 %v313_v14  ;;  %589 = vmatpush.msra.mxu3 %v313_v14 }
  0x96   : > { %346 = vmatpush.msra.mxu0 %v313_v14  ;;  %587 = vmatpush.msra.mxu1 %v313_v14 }
  0x97   : > { %591 = vmatpush.msra.mxu2 %v312_v15  ;;  %592 = vmatpush.msra.mxu3 %v312_v15 }
  0x98   : > { %357 = vmatmul.f32.vlgmr.msra.gmra.mxu2 %v308_v16  ;;  %363 = vmatmul.f32.vlgmr.msra.gmra.mxu3 %v310_v17 }
  0x99   : > { %347 = vmatpush.msra.mxu0 %v312_v15  ;;  %590 = vmatpush.msra.mxu1 %v312_v15 }
  0x9a   : > { %348 = vmatmul.f32.vlgmr.msra.gmra.mxu0 %v305_v18  ;;  %354 = vmatmul.f32.vlgmr.msra.gmra.mxu1 %v307_v19 }
  0xa0   : > { %360 = vmatmul.f32.gmra.mxu2 %v309_v20  ;;  %366 = vmatmul.f32.gmra.mxu3 %v311_v21 }
  0xa2   : > { %351 = vmatmul.f32.gmra.mxu0 %v306_v22 }
 0x117   : > { %v349_v24 = vpop.f32.mrf.mxu0  ;;  %v355_v26 = vpop.f32.mrf.mxu1 }
 0x118   : > { %v350_v28 = vadd.f32 %v655_v23, %v349_v24  ;;  %v356_v29 = vadd.f32 %v655_v23, %v355_v26 }
 0x11a   : > { %v377_v30 = vadd.f32 %v370_v25, %v350_v28  ;;  %v379_v31 = vadd.f32 %v372_v27, %v356_v29 }
 0x11b   : > { %v358_v32 = vpop.f32.mrf.mxu2  ;;  %v364_v34 = vpop.f32.mrf.mxu3 }
 0x11c   : > { %384 = vst [vmem:[%s1098_s13] sm:$0xff] %v377_v30  ;;  %v359_v36 = vadd.f32 %v655_v23, %v358_v32  ;;  %v365_v37 = vadd.f32 %v655_v23, %v364_v34 }
 0x11d   : > { %386 = vst [vmem:[%s1098_s13 + $0x10] sm:$0xff] %v379_v31 }
 0x11e   : > { %v380_v38 = vadd.f32 %v373_v33, %v359_v36  ;;  %v382_v39 = vadd.f32 %v375_v35, %v365_v37 }
 0x11f   : > { %v352_v40 = vpop.f32.mrf.mxu0 }
 0x120   : > { %387 = vst [vmem:[%s1098_s13 + $0x18] sm:$0xff] %v380_v38  ;;  %v353_v42 = vadd.f32 %v655_v23, %v352_v40 }
 0x121   : > { %389 = vst [vmem:[%s1098_s13 + $0x28] sm:$0xff] %v382_v39 }
 0x122   : > { %v378_v43 = vadd.f32 %v371_v41, %v353_v42 }
 0x123   : > { %v361_v44 = vpop.f32.mrf.mxu2  ;;  %v367_v46 = vpop.f32.mrf.mxu3 }
 0x124   : > { %385 = vst [vmem:[%s1098_s13 + $0x8] sm:$0xff] %v378_v43  ;;  %v362_v48 = vadd.f32 %v655_v23, %v361_v44  ;;  %v368_v49 = vadd.f32 %v655_v23, %v367_v46 }
 0x125   : > { %398 = sbr.rel (!%p1190_p6) target bundleno = 329 (0x149), region = 52 }
 0x126   : > { %v381_v50 = vadd.f32 %v374_v45, %v362_v48  ;;  %v383_v51 = vadd.f32 %v376_v47, %v368_v49 }
 0x128   : > { %388 = vst [vmem:[%s1098_s13 + $0x20] sm:$0xff] %v381_v50 }
 0x129   : > { %390 = vst [vmem:[%s1098_s13 + $0x30] sm:$0xff] %v383_v51 }
 0x12a   : > { %s1203_s9 = smov (!%p401_p12, %s400_s9), 7 }
 0x12b   : > { %s535_s5 = sshll.u32 %s1203_s9, 3 }
 0x12c   : > { %s404_s22 = ssub.s32 56, %s535_s5 }
 0x12d   : > { %s405_s24 = sshll.u32 %s404_s22, 4 }
 0x12e   : > { %406 = vsyncadd %s392_s2, %s405_s24  ;;  %p1119_p7 = scmp.ne.s32.totalorder %s535_s5, 0  ;;  %s544_s6 = smul.u32 56, %s909_s19 }
 0x12f   : > { %s411_s23 = sshll.u32 %s1098_s13, 4  ;;  %s539_s7 = sshll.u32 %s1203_s9, 7  ;;  %s1129_s23 = int_to_ptr.vmem [resolvable:$true] %s411_s23 }
 0x130   : > { %s409_s25 = scalar_lea.hbm %s1176_s4, %s544_s6  ;;  %s764_s12 = sshra.s32 %s1129_s23, 4  ;;  %s765_s12 = int_to_ptr.vmem [resolvable:$true] %s764_s12 }
 0x131   : > { %s413_s29 = sshll.u32 %s409_s25, 4  ;;  %s766_s30 = sshrl.u32 %s539_s7, 4  ;;  %s1131_s29 = int_to_ptr.hbm [resolvable:$true] %s413_s29 }
 0x132   : > { %s771_s26 = scalar_lea.vmem %s765_s12, %s766_s30  ;;  %s860_s19 = smov [#allocation8]  }
 0x133   : > { %p772_p10 = scmp.ne.s32.totalorder %s765_s12, %s771_s26  ;;  %s775_s8 = scalar_lea.vmem %s860_s19, 112 }
 0x134   : > { %p777_p2 = scmp.lt.s32.totalorder %s775_s8, %s771_s26 }
 0x135   : > { %p773_p1 = pnand %p772_p10, %p1119_p7 }
 0x137   : > { %p774_p0 = pneg %p773_p1 }
 0x139   : > { %p779_p3 = pnand %p777_p2, %p774_p0 }
 0x13b   : > { %782 = shalt.err (!%p779_p3)
}
 0x13c   : > { %s783_s13 = sshra.s32 %s1131_s29, 4  ;;  %s794_s24 = scalar_lea.hbm %s1176_s4, 200  ;;  %s784_s13 = int_to_ptr.hbm [resolvable:$true] %s783_s13 }
 0x13d   : > { %s790_s20 = scalar_lea.hbm %s784_s13, %s766_s30  ;;  %p795_p11 = scmp.lt.s32.totalorder %s784_s13, %s1176_s4 }
 0x13e   : > { %p791_p8 = scmp.ne.s32.totalorder %s784_s13, %s790_s20  ;;  %p796_p13 = scmp.lt.s32.totalorder %s794_s24, %s790_s20 }
 0x140   : > { %p792_p9 = pnand %p791_p8, %p1119_p7  ;;  %p797_p5 = por %p796_p13, %p795_p11 }
 0x142   : > { %p793_p4 = pneg %p792_p9 }
 0x144   : > { %p798_p6 = pnand %p797_p5, %p793_p4 }
 0x146   : > { %801 = shalt.err (!%p798_p6)
}
 0x147   : > { %s861_s14 = smov 128   ;;  %s862_s25 = smov 8  }
 0x148   : > { %419 = dma.vmem_to_hbm [thread:$0]  (%p1119_p7), %s1129_s23, %s539_s7, %s1131_s29, %s392_s2, %s861_s14, %s861_s14, %s862_s25  }
 0x149 PF: > { %p613_p12 = scmp.ge.s32.totalorder %s849_s18, 2  ;;  %s428_s12 = sand.u32 1, %s837_s15  }
 0x14a   : > { %p1192_p10 = scmp.ne.s32.totalorder %s1183_s28, 0  ;;  %s429_s30 = scalar_lea.sflag [#allocation4], %s428_s12 }
 0x14c   : > { %p608_p1 = pnand %p613_p12, %p1192_p10 }
 0x14e   : > { %p609_p0 = pneg %p608_p1 }
 0x150   : > { %832 = dma.done.wait (%p609_p0), %s429_s30, 896  }
 0x151   : > { %834 = vsyncadd (%p609_p0), %s429_s30, 4294966400  ;;  %s1193_s27 = sld [smem:[#allocation13_spill]]  ;;  %p20_p2 = scmp.ge.s32.totalorder %s913_s21, 6  }
 0x152   : > { %s1194_s15 = smov %s841_s16  ;;  %s1195_s16 = smov %s845_s17 }
 0x153   : > { %s1197_s18 = smov %s913_s21  ;;  %22 = sbr.rel (!%p20_p2) target bundleno = 9 (0x9), region = 98 }
 0x157   : > { %s1196_s17 = smov %s1193_s27 }
 0x158   :  { %435 = vsyncpa [#allocation3], 1 }
 0x159   :  { %437 = vsyncpa [#allocation3 + $0x1], 1 }
 0x15a   :  { %438 = vsyncpa [#allocation6], 1 }
 0x15b   :  { %440 = vsyncpa [#allocation6 + $0x1], 1 }
 0x15c   :  { %441 = vsyncpa [#allocation4], 1 }
 0x15d   :  { %443 = vsyncpa [#allocation4 + $0x1], 1 }

</bundles_post_ra>
